<compile_context>
chip_gen: v6e
topology: v6e:2x2x1
jax: 0.10.0
libtpu: 0.0.40
codegen_flags: <defaults>
</compile_context>

<pallas_src>
import functools
import math

import jax
import jax.numpy as jnp
from jax import lax
from jax.experimental import pallas as pl
from jax.experimental.pallas import tpu as pltpu

BN_EPS = 1e-5


def _round_up(a, b):
    return (a + b - 1) // b * b


# ----------------------------- pass 1: BN statistics -----------------------------
def _stats_kernel(x_ref, w1_ref, sum_ref, ssq_ref, *, tile_n, tiles_per_core, n_valid):
    c = pl.program_id(0)   # core-split axis ("parallel")
    j = pl.program_id(1)   # row-tile axis  ("arbitrary", resident accumulator)

    @pl.when(j == 0)
    def _():
        sum_ref[...] = jnp.zeros_like(sum_ref)
        ssq_ref[...] = jnp.zeros_like(ssq_ref)

    # fc1 without bias: the bias is a per-feature constant that cancels under the
    # training-mode BN that follows (folded into scale/shift in the glue stage).
    raw = jnp.dot(x_ref[...], w1_ref[...], preferred_element_type=jnp.float32)

    # Global row index of each row in this (possibly partial / duplicated) tile.
    # Rows >= n_valid are either Pallas partial-block garbage or the clamped
    # duplicate tile of an odd core split -> zero them (handles NaN garbage too).
    tile_idx = c * tiles_per_core + j
    rows = tile_idx * tile_n + lax.broadcasted_iota(jnp.int32, (tile_n, 1), 0)
    raw = jnp.where(rows < n_valid, raw, 0.0)

    # Axis-0 reduction on the MXU (ones @ tile), not an XLU cross-sublane reduce.
    ones = jnp.ones((1, tile_n), jnp.float32)
    sum_ref[...] += jnp.dot(ones, raw, preferred_element_type=jnp.float32)
    ssq_ref[...] += jnp.dot(ones, raw * raw, preferred_element_type=jnp.float32)


# --------------------- pass 2: fc1 -> folded BN -> ReLU -> fc2 --------------------
def _apply_kernel(x_ref, w1_ref, scale_ref, shift_ref, w2_ref, b2_ref, o_ref):
    raw = jnp.dot(x_ref[...], w1_ref[...], preferred_element_type=jnp.float32)
    # Folded BN (single mul+add per element) + ReLU, in f32 on the VPU.
    h = jnp.maximum(raw * scale_ref[...] + shift_ref[...], 0.0)
    out = jnp.dot(h.astype(w2_ref.dtype), w2_ref[...],
                  preferred_element_type=jnp.float32)
    # Unpadded (tile_n, D_out) store; Pallas drops OOB rows of the last partial tile.
    o_ref[...] = out + b2_ref[...]


def mlp_forward(x, w1, b1, gamma, beta, w2, b2, *, tile_n=4096,
                matmul_dtype=jnp.float32):
    """x: [..., D_in] -> [..., D_out]. Training-mode BatchNorm over all leading dims."""
    del b1  # fc1 bias cancels exactly under training-mode BatchNorm (see header).
    orig_shape = x.shape
    D_in = orig_shape[-1]
    H = w1.shape[1]
    D_out = w2.shape[1]
    N = math.prod(orig_shape[:-1])

    # Cast once (before any copy); reshape is free.  No row padding of x.
    x2d = x.reshape(N, D_in).astype(matmul_dtype)

    # Lane-dense padding of the hidden axis only (H -> multiple of 128).  The output
    # feature axis is left UNPADDED so the HBM writeback is exactly N*D_out.
    Hp = _round_up(H, 128)
    w1p = jnp.zeros((D_in, Hp), matmul_dtype).at[:, :H].set(w1.astype(matmul_dtype))
    w2p = jnp.zeros((Hp, D_out), matmul_dtype).at[:H, :].set(w2.astype(matmul_dtype))
    gammap = jnp.zeros((1, Hp), jnp.float32).at[:, :H].set(gamma.reshape(1, H))
    betap = jnp.zeros((1, Hp), jnp.float32).at[:, :H].set(beta.reshape(1, H))
    b2r = b2.reshape(1, D_out).astype(jnp.float32)

    # Row tiling: big tiles to amortize per-step overhead; clamp for small N;
    # 16-row alignment for bf16 sublane packing.
    row_align = 16 if matmul_dtype == jnp.bfloat16 else 8
    tile_n = max(row_align, min(tile_n, _round_up(N, row_align)))
    tile_n = _round_up(tile_n, row_align)
    num_tiles = pl.cdiv(N, tile_n)

    # Split the stats pass across (up to) two TensorCores (v7x); no-op elsewhere.
    num_cores = 2 if num_tiles >= 2 else 1
    tpc = pl.cdiv(num_tiles, num_cores)

    vmem_limit = 32 * 1024 * 1024  # safe on v5e/v6e (128 MiB) and v7x (64 MiB)
    cparams_stats = pltpu.CompilerParams(
        dimension_semantics=("parallel", "arbitrary"),
        vmem_limit_bytes=vmem_limit)
    cparams_apply = pltpu.CompilerParams(
        dimension_semantics=("parallel",),
        vmem_limit_bytes=vmem_limit)

    # Clamp the tile index so the odd-count core split never requests a block past
    # the array; the duplicated tile is zeroed by the row-validity mask in-kernel.
    def x_stats_map(c, j):
        return (jnp.minimum(c * tpc + j, num_tiles - 1), 0)

    # ---- pass 1: per-feature sum / sum-of-squares of the fc1 output ----
    ssum, ssq = pl.pallas_call(
        functools.partial(_stats_kernel, tile_n=tile_n, tiles_per_core=tpc,
                          n_valid=N),
        grid=(num_cores, tpc),
        in_specs=[
            pl.BlockSpec((tile_n, D_in), x_stats_map),
            pl.BlockSpec((D_in, Hp), lambda c, j: (0, 0)),
        ],
        out_specs=(
            pl.BlockSpec((None, 1, Hp), lambda c, j: (c, 0, 0)),
            pl.BlockSpec((None, 1, Hp), lambda c, j: (c, 0, 0)),
        ),
        out_shape=(
            jax.ShapeDtypeStruct((num_cores, 1, Hp), jnp.float32),
            jax.ShapeDtypeStruct((num_cores, 1, Hp), jnp.float32),
        ),
        compiler_params=cparams_stats,
    )(x2d, w1p)

    # ---- tiny glue on [1, Hp]: merge core partials, fold BN into scale/shift ----
    ssum = jnp.sum(ssum, axis=0)                     # (1, Hp)
    ssq = jnp.sum(ssq, axis=0)                       # (1, Hp)
    mean = ssum / N
    var = jnp.maximum(ssq / N - mean * mean, 0.0)    # biased (training-mode) variance
    scale = gammap * lax.rsqrt(var + BN_EPS)
    shift = betap - mean * scale

    # ---- pass 2: fc1 -> BN(scale/shift) -> ReLU -> fc2, row-tiled & pipelined ----
    out2d = pl.pallas_call(
        _apply_kernel,
        grid=(num_tiles,),
        in_specs=[
            pl.BlockSpec((tile_n, D_in), lambda i: (i, 0)),
            pl.BlockSpec((D_in, Hp), lambda i: (0, 0)),
            pl.BlockSpec((1, Hp), lambda i: (0, 0)),
            pl.BlockSpec((1, Hp), lambda i: (0, 0)),
            pl.BlockSpec((Hp, D_out), lambda i: (0, 0)),
            pl.BlockSpec((1, D_out), lambda i: (0, 0)),
        ],
        out_specs=pl.BlockSpec((tile_n, D_out), lambda i: (i, 0)),
        out_shape=jax.ShapeDtypeStruct((N, D_out), jnp.float32),
        compiler_params=cparams_apply,
    )(x2d, w1p, scale, shift, w2p, b2r)

    return out2d.reshape(*orig_shape[:-1], D_out)


def reference_forward(x, w1, b1, gamma, beta, w2, b2):
    # Pure-JAX reference mirroring the PyTorch module's forward (training-mode BN).
    D_in = x.shape[-1]
    h = x.reshape(-1, D_in) @ w1 + b1
    mean = jnp.mean(h, axis=0, keepdims=True)
    var = jnp.mean((h - mean) ** 2, axis=0, keepdims=True)
    h = (h - mean) / jnp.sqrt(var + BN_EPS) * gamma + beta
    h = jnp.maximum(h, 0.0)
    out = h @ w2 + b2
    return out.reshape(*x.shape[:-1], -1)


if __name__ == "__main__":
    input_dim, hidden_dim, output_dim = 16, 32, 16

    key = jax.random.PRNGKey(0)
    kx, kw1, kb1, kw2, kb2, kx2 = jax.random.split(key, 6)

    # PyTorch-Linear-style uniform init; BatchNorm affine init: weight=1, bias=0.
    bound1 = 1.0 / math.sqrt(input_dim)
    w1 = jax.random.uniform(kw1, (input_dim, hidden_dim), jnp.float32, -bound1, bound1)
    b1 = jax.random.uniform(kb1, (1, hidden_dim), jnp.float32, -bound1, bound1)
    gamma = jnp.ones((1, hidden_dim), jnp.float32)
    beta = jnp.zeros((1, hidden_dim), jnp.float32)
    bound2 = 1.0 / math.sqrt(hidden_dim)
    w2 = jax.random.uniform(kw2, (hidden_dim, output_dim), jnp.float32, -bound2, bound2)
    b2 = jax.random.uniform(kb2, (1, output_dim), jnp.float32, -bound2, bound2)

    # --- test 1: small shape implied by the module, f32 matmuls, strict check ---
    B, S = 2, 8
    x = jax.random.normal(kx, (B, S, input_dim), dtype=jnp.float32)
    out = jax.block_until_ready(mlp_forward(x, w1, b1, gamma, beta, w2, b2))
    ref = reference_forward(x, w1, b1, gamma, beta, w2, b2)
    assert out.shape == (B, S, output_dim)
    assert jnp.allclose(out, ref, atol=1e-3, rtol=1e-3), "mismatch vs reference (f32 small)"

    # --- test 2: multi-tile N, odd tile count, 2-core stats split, partial last block ---
    B2, S2 = 3, 200  # N = 600, tile_n = 256 -> 3 tiles; stats grid (2, 2) with clamp
    x_big = jax.random.normal(kx2, (B2, S2, input_dim), dtype=jnp.float32)
    out_big = jax.block_until_ready(
        mlp_forward(x_big, w1, b1, gamma, beta, w2, b2, tile_n=256))
    ref_big = reference_forward(x_big, w1, b1, gamma, beta, w2, b2)
    assert out_big.shape == (B2, S2, output_dim)
    assert jnp.allclose(out_big, ref_big, atol=1e-3, rtol=1e-3), "mismatch (f32 tiled)"

    # --- test 3: bf16 matmul operands (v6e/v7x MXU path), loose tolerance ---
    out_bf16 = jax.block_until_ready(
        mlp_forward(x, w1, b1, gamma, beta, w2, b2, matmul_dtype=jnp.bfloat16))
    assert jnp.allclose(out_bf16, ref, atol=0.1, rtol=0.1), "mismatch (bf16 path)"

    print("KERNEL_OK")
</pallas_src>

<mosaic_0001>
module attributes {stable_mosaic.version = 11 : i64} {
  func.func @_stats_kernel(%arg0: i32, %arg1: i32, %arg2: memref<16x16xf32, #tpu.memory_space<vmem>>, %arg3: memref<16x128xf32, #tpu.memory_space<vmem>>, %arg4: memref<1x1x128xf32, #tpu.memory_space<vmem>>, %arg5: memref<1x1x128xf32, #tpu.memory_space<vmem>>) attributes {dimension_semantics = [#tpu.dimension_semantics<parallel>, #tpu.dimension_semantics<arbitrary>], iteration_bounds = array<i64: 1, 1>, scalar_prefetch = 0 : i64, scratch_operands = 0 : i64, tpu.core_type = #tpu.core_type<tc>, window_params = [{transform_indices = @transform_0, window_bounds = array<i64: 16, 16>}, {pipeline_mode = #tpu.pipeline_mode<synchronous>, transform_indices = @transform_1, window_bounds = array<i64: 16, 128>}, {transform_indices = @transform_2, window_bounds = array<i64: 1, 1, 128>}, {transform_indices = @transform_3, window_bounds = array<i64: 1, 1, 128>}]} {
    %c0_i32 = arith.constant 0 : i32
    %0 = arith.cmpi eq, %arg1, %c0_i32 : i32
    %1 = arith.extui %0 : i1 to i32
    %c0_i32_0 = arith.constant 0 : i32
    %2 = arith.cmpi ne, %1, %c0_i32_0 : i32
    scf.if %2 {
      %cst_21 = arith.constant 0.000000e+00 : f32
      %34 = vector.broadcast %cst_21 : f32 to vector<1x128xf32>
      %c0_22 = arith.constant 0 : index
      %c0_23 = arith.constant 0 : index
      %c0_24 = arith.constant 0 : index
      %35 = vector.load %arg4[%c0_22, %c0_23, %c0_24] : memref<1x1x128xf32, #tpu.memory_space<vmem>>, vector<1x1x128xf32>
      %36 = vector.shape_cast %35 : vector<1x1x128xf32> to vector<1x128xf32>
      %37 = vector.shape_cast %34 : vector<1x128xf32> to vector<1x1x128xf32>
      tpu.vector_store %arg4[%c0_22, %c0_23, %c0_24], %37 {strides = array<i32>} : memref<1x1x128xf32, #tpu.memory_space<vmem>>, vector<1x1x128xf32>,
      %cst_25 = arith.constant 0.000000e+00 : f32
      %38 = vector.broadcast %cst_25 : f32 to vector<1x128xf32>
      %c0_26 = arith.constant 0 : index
      %c0_27 = arith.constant 0 : index
      %c0_28 = arith.constant 0 : index
      %39 = vector.load %arg5[%c0_26, %c0_27, %c0_28] : memref<1x1x128xf32, #tpu.memory_space<vmem>>, vector<1x1x128xf32>
      %40 = vector.shape_cast %39 : vector<1x1x128xf32> to vector<1x128xf32>
      %41 = vector.shape_cast %38 : vector<1x128xf32> to vector<1x1x128xf32>
      tpu.vector_store %arg5[%c0_26, %c0_27, %c0_28], %41 {strides = array<i32>} : memref<1x1x128xf32, #tpu.memory_space<vmem>>, vector<1x1x128xf32>,
    } else {
    }
    %c0 = arith.constant 0 : index
    %c0_1 = arith.constant 0 : index
    %3 = vector.load %arg2[%c0, %c0_1] : memref<16x16xf32, #tpu.memory_space<vmem>>, vector<16x16xf32>
    %c0_2 = arith.constant 0 : index
    %c0_3 = arith.constant 0 : index
    %4 = vector.load %arg3[%c0_2, %c0_3] : memref<16x128xf32, #tpu.memory_space<vmem>>, vector<16x128xf32>
    %cst = arith.constant dense<0.000000e+00> : vector<16x128xf32>
    %5 = tpu.matmul %3, %4, %cst {dimension_numbers = #tpu.dot_dimension_numbers<[1], [0], [0], [1], [0, 0, 1, 1], [], []>} : vector<16x16xf32>, vector<16x128xf32>, vector<16x128xf32> -> vector<16x128xf32>
    %c1_i32 = arith.constant 1 : i32
    %6 = arith.muli %arg0, %c1_i32 : i32
    %7 = arith.addi %6, %arg1 : i32
    %c16_i32 = arith.constant 16 : i32
    %8 = arith.muli %7, %c16_i32 : i32
    %9 = tpu.iota {dimensions = array<i32: 0>} : vector<16x1xi32>
    %10 = vector.broadcast %8 : i32 to vector<16x1xi32>
    %11 = arith.addi %10, %9 : vector<16x1xi32>
    %c16_i32_4 = arith.constant 16 : i32
    %12 = vector.broadcast %c16_i32_4 : i32 to vector<16x1xi32>
    %13 = arith.cmpi slt, %11, %12 : vector<16x1xi32>
    %cst_5 = arith.constant 0.000000e+00 : f32
    %14 = vector.shape_cast %13 : vector<16x1xi1> to vector<16x1xi1>
    %15 = vector.broadcast %14 : vector<16x1xi1> to vector<16x128xi1>
    %16 = vector.broadcast %cst_5 : f32 to vector<16x128xf32>
    %17 = arith.select %15, %5, %16 : vector<16x128xi1>, vector<16x128xf32>
    %cst_6 = arith.constant 1.000000e+00 : f32
    %18 = vector.broadcast %cst_6 : f32 to vector<1x16xf32>
    %c0_7 = arith.constant 0 : index
    %c0_8 = arith.constant 0 : index
    %c0_9 = arith.constant 0 : index
    %19 = vector.load %arg4[%c0_7, %c0_8, %c0_9] : memref<1x1x128xf32, #tpu.memory_space<vmem>>, vector<1x1x128xf32>
    %20 = vector.shape_cast %19 : vector<1x1x128xf32> to vector<1x128xf32>
    %cst_10 = arith.constant dense<0.000000e+00> : vector<1x128xf32>
    %21 = tpu.matmul %18, %17, %cst_10 {dimension_numbers = #tpu.dot_dimension_numbers<[1], [0], [0], [1], [0, 0, 1, 1], [], []>} : vector<1x16xf32>, vector<16x128xf32>, vector<1x128xf32> -> vector<1x128xf32>
    %22 = arith.addf %20, %21 : vector<1x128xf32>
    %c0_11 = arith.constant 0 : index
    %c0_12 = arith.constant 0 : index
    %c0_13 = arith.constant 0 : index
    %23 = vector.load %arg4[%c0_11, %c0_12, %c0_13] : memref<1x1x128xf32, #tpu.memory_space<vmem>>, vector<1x1x128xf32>
    %24 = vector.shape_cast %23 : vector<1x1x128xf32> to vector<1x128xf32>
    %25 = vector.shape_cast %22 : vector<1x128xf32> to vector<1x1x128xf32>
    tpu.vector_store %arg4[%c0_11, %c0_12, %c0_13], %25 {strides = array<i32>} : memref<1x1x128xf32, #tpu.memory_space<vmem>>, vector<1x1x128xf32>,
    %c0_14 = arith.constant 0 : index
    %c0_15 = arith.constant 0 : index
    %c0_16 = arith.constant 0 : index
    %26 = vector.load %arg5[%c0_14, %c0_15, %c0_16] : memref<1x1x128xf32, #tpu.memory_space<vmem>>, vector<1x1x128xf32>
    %27 = vector.shape_cast %26 : vector<1x1x128xf32> to vector<1x128xf32>
    %28 = arith.mulf %17, %17 : vector<16x128xf32>
    %cst_17 = arith.constant dense<0.000000e+00> : vector<1x128xf32>
    %29 = tpu.matmul %18, %28, %cst_17 {dimension_numbers = #tpu.dot_dimension_numbers<[1], [0], [0], [1], [0, 0, 1, 1], [], []>} : vector<1x16xf32>, vector<16x128xf32>, vector<1x128xf32> -> vector<1x128xf32>
    %30 = arith.addf %27, %29 : vector<1x128xf32>
    %c0_18 = arith.constant 0 : index
    %c0_19 = arith.constant 0 : index
    %c0_20 = arith.constant 0 : index
    %31 = vector.load %arg5[%c0_18, %c0_19, %c0_20] : memref<1x1x128xf32, #tpu.memory_space<vmem>>, vector<1x1x128xf32>
    %32 = vector.shape_cast %31 : vector<1x1x128xf32> to vector<1x128xf32>
    %33 = vector.shape_cast %30 : vector<1x128xf32> to vector<1x1x128xf32>
    tpu.vector_store %arg5[%c0_18, %c0_19, %c0_20], %33 {strides = array<i32>} : memref<1x1x128xf32, #tpu.memory_space<vmem>>, vector<1x1x128xf32>,
    return
  }
  func.func @transform_0(%arg0: i32, %arg1: i32) -> (i32, i32) {
    %c1_i32 = arith.constant 1 : i32
    %0 = arith.muli %arg0, %c1_i32 : i32
    %1 = arith.addi %0, %arg1 : i32
    %c0_i32 = arith.constant 0 : i32
    %2 = arith.minsi %1, %c0_i32 : i32
    %c0_i32_0 = arith.constant 0 : i32
    %c0_i32_1 = arith.constant 0 : i32
    return %2, %c0_i32_0 : i32, i32
  }
  func.func @transform_1(%arg0: i32, %arg1: i32) -> (i32, i32) {
    %c0_i32 = arith.constant 0 : i32
    %c0_i32_0 = arith.constant 0 : i32
    %c0_i32_1 = arith.constant 0 : i32
    return %c0_i32, %c0_i32_0 : i32, i32
  }
  func.func @transform_2(%arg0: i32, %arg1: i32) -> (i32, i32, i32) {
    %c0_i32 = arith.constant 0 : i32
    %c0_i32_0 = arith.constant 0 : i32
    %c0_i32_1 = arith.constant 0 : i32
    return %arg0, %c0_i32, %c0_i32_0 : i32, i32, i32
  }
  func.func @transform_3(%arg0: i32, %arg1: i32) -> (i32, i32, i32) {
    %c0_i32 = arith.constant 0 : i32
    %c0_i32_0 = arith.constant 0 : i32
    %c0_i32_1 = arith.constant 0 : i32
    return %arg0, %c0_i32, %c0_i32_0 : i32, i32, i32
  }
}

</mosaic_0001>

<bundles_post_ra>
// kernel: tpu_custom_call.1
= control target key start
LH: loop header
LB: loop body
LE: loop exit
PB: predicated region body
PF: predicated region fallthrough
CT: control target
= control target key end

     0   :  { %9 = vsyncpa [#allocation3], 0  ;;  %s521_s0 = inlined_call_operand.hbm [shape: f32[16,16], index: 0, kind: input, shape index: {}]   ;;  %s522_s1 = inlined_call_operand.hbm [shape: f32[16,128], index: 1, kind: input, shape index: {}]   ;;  %s523_s2 = inlined_call_operand.hbm [shape: f32[1,1,128], index: 2, kind: output, shape index: {0}]   ;;  %s524_s3 = inlined_call_operand.hbm [shape: f32[1,1,128], index: 3, kind: output, shape index: {1}]  }
   0x1   :  { %10 = vsyncpa [#allocation6], 0 }
   0x2   :  { %11 = vsyncpa [#allocation4], 0 }
   0x3   :  { %12 = vsyncpa [#allocation9], 0  ;;  %s476_s12 = smov [#allocation2]  }
   0x4   :  { %s24_s13 = sshll.u32 %s476_s12, 4  ;;  %s25_s13 = int_to_ptr.vmem [resolvable:$true] %s24_s13 }
   0x5   :  { %s396_s14 = scalar_lea.vmem %s25_s13, 256  ;;  %p401_p1 = scmp.lt.s32.totalorder %s25_s13, %s25_s13 }
   0x6   :  { %p397_p0 = scmp.ne.s32.totalorder %s25_s13, %s396_s14  ;;  %p402_p2 = scmp.lt.s32.totalorder %s396_s14, %s396_s14 }
   0x8   :  { %p403_p3 = por %p402_p2, %p401_p1 }
   0xa   :  { %p404_p4 = pnand %p403_p3, %p397_p0 }
   0xc   :  { %407 = shalt.err (!%p404_p4)
}
   0xd   :  { %s477_s15 = smov 128   ;;  %s478_s16 = smov 8  }
   0xe   :  { %30 = dma.hbm_to_vmem [thread:$0]  %s521_s0, 256, %s25_s13, [#allocation3], %s477_s15, %s477_s15, %s478_s16  }
   0xf   :  { %s479_s19 = smov [#allocation5]  }
  0x10   :  { %s36_s20 = sshll.u32 %s479_s19, 4  ;;  %s37_s20 = int_to_ptr.vmem [resolvable:$true] %s36_s20 }
  0x11   :  { %s416_s21 = scalar_lea.vmem %s37_s20, 256  ;;  %p421_p6 = scmp.lt.s32.totalorder %s37_s20, %s37_s20 }
  0x12   :  { %p417_p5 = scmp.ne.s32.totalorder %s37_s20, %s416_s21  ;;  %p422_p7 = scmp.lt.s32.totalorder %s416_s21, %s416_s21 }
  0x14   :  { %p423_p8 = por %p422_p7, %p421_p6 }
  0x16   :  { %p424_p9 = pnand %p423_p8, %p417_p5 }
  0x18   :  { %427 = shalt.err (!%p424_p9)
}
  0x19   :  { %42 = dma.hbm_to_vmem [thread:$0]  %s522_s1, 256, %s37_s20, [#allocation6], %s477_s15, %s477_s15, %s478_s16  }
  0x1a   :  { %468 = dma.done.wait [#allocation3], 256  }
  0x1b   :  { %469 = vsyncadd [#allocation3], 4294967040 }
  0x1c   :  { %470 = dma.done.wait [#allocation6], 256  }
  0x1d   :  { %471 = vsyncadd [#allocation6], 4294967040  ;;  %vm63_vm0 = vcmask 130048   ;;  %v62_v0 = vld [vmem:[#allocation5 + $0x8] sm:$0xff]  ;;  %v61_v1 = vld [vmem:[#allocation5] sm:$0xff]  ;;  %v480_v4 = vmov 0.0  }
  0x1e   :  { %v59_v2 = vld [vmem:[#allocation2] sm:$0xff]  ;;  %358 = vmatprep.subr.mxu0 %v62_v0  ;;  %v60_v3 = vld [vmem:[#allocation2 + $0x8] sm:$0xff]  ;;  %365 = vmatprep.subr.mxu1 %v480_v4  ;;  %57 = vst [vmem:[#allocation7] sm:$0x1] %v480_v4  ;;  %58 = vst [vmem:[#allocation8] sm:$0x1] %v480_v4 }
  0x1f   :  { %362 = vmatprep.mubr.msk.f32.mxu0 %vm63_vm0, %v59_v2  ;;  %359 = vmatpush3.msra.mxu0 %v62_v0  ;;  %vm481_vm1 = vmmov 0   ;;  %v482_v9 = vmov 1.0   ;;  %s483_s0 = smov [#allocation7]   ;;  %s484_s24 = smov [#allocation8]  }
  0x20   :  { %360 = vmatprep.subr.mxu0 %v61_v1  ;;  %369 = vmatprep.mubr.msk.f32.mxu1 %vm481_vm1, %v480_v4  ;;  %s318_s1 = sshll.u32 %s483_s0, 4  ;;  %s328_s25 = sshll.u32 %s484_s24, 4  ;;  %s319_s1 = int_to_ptr.vmem [resolvable:$true] %s318_s1  ;;  %s329_s25 = int_to_ptr.vmem [resolvable:$true] %s328_s25 }
  0x21   :  { %361 = vmatpush3.msra.mxu0 %v61_v1  ;;  %s428_s26 = scalar_lea.vmem %s319_s1, 16  ;;  %s432_s27 = scalar_lea.vmem %s319_s1, 32 }
  0x22   :  { %363 = vmatmul.mubr.msk.f32.vlgmr.msra.gmra.mxu0 %vm63_vm0, %v60_v3  ;;  %372 = vmatprep.subr.mxu0 %v480_v4  ;;  %p429_p10 = scmp.ne.s32.totalorder %s319_s1, %s428_s26  ;;  %p433_p11 = scmp.lt.s32.totalorder %s319_s1, %s319_s1 }
  0x23   :  { %376 = vmatprep.mubr.msk.f32.mxu0 %vm481_vm1, %v480_v4  ;;  %p434_p12 = scmp.lt.s32.totalorder %s432_s27, %s428_s26 }
  0x25   :  { %v161_v10 = vld [vmem:[#allocation7] sm:$0x1]  ;;  %v237_v12 = vld [vmem:[#allocation8] sm:$0x1]  ;;  %p435_p13 = por %p434_p12, %p433_p11 }
  0x27   :  { %p436_p0 = pnand %p435_p13, %p429_p10 }
  0xe2   :  { %v364_v5 = vpop.f32.mrf.mxu0 }
  0xe3   :  { %v239_v6 = vmul.f32 %v364_v5, %v364_v5  ;;  %366 = vmatpush3.msra.mxu1 %v364_v5 }
  0xe4   :  { %v136_v7 = vpop.f32.mrf.mxu0  ;;  %367 = vmatprep.subr.mxu1 %v480_v4 }
  0xe5   :  { %v238_v8 = vmul.f32 %v136_v7, %v136_v7  ;;  %368 = vmatpush3.msra.mxu1 %v136_v7  ;;  %373 = vmatpush3.msra.mxu0 %v239_v6 }
  0xe6   :  { %374 = vmatprep.subr.mxu0 %v480_v4  ;;  %370 = vmatmul.mubr.msk.f32.vlgmr.msra.gmra.mxu1 %vm63_vm0, %v482_v9 }
  0xe7   :  { %375 = vmatpush3.msra.mxu0 %v238_v8 }
  0xe8   :  { %377 = vmatmul.mubr.msk.f32.vlgmr.msra.gmra.mxu0 %vm63_vm0, %v482_v9 }
 0x1a6   :  { %v231_v11 = vpop.f32.mrf.mxu1 }
 0x1a7   :  { %v235_v13 = vadd.f32 %v231_v11, %v161_v10 }
 0x1a8   :  { %v306_v14 = vpop.f32.mrf.mxu0  ;;  %v371_v15 = vpop.f32.mrf.mxu1 }
 0x1a9   :  { %236 = vst [vmem:[#allocation7] sm:$0x1] %v235_v13  ;;  %v310_v16 = vadd.f32 %v306_v14, %v237_v12 }
 0x1aa   :  { %v378_v17 = vpop.f32.mrf.mxu0 }
 0x1ab   :  { %439 = shalt.err (!%p436_p0)
}
 0x1ac   :  { %321 = dma.vmem_to_hbm [thread:$0]  %s319_s1, 16, %s523_s2, [#allocation4]   ;;  %311 = vst [vmem:[#allocation8] sm:$0x1] %v310_v16 }
 0x1ad   :  { %s448_s30 = scalar_lea.vmem %s329_s25, 16  ;;  %s452_s4 = scalar_lea.vmem %s329_s25, 32 }
 0x1ae   :  { %p449_p1 = scmp.ne.s32.totalorder %s329_s25, %s448_s30  ;;  %p453_p2 = scmp.lt.s32.totalorder %s329_s25, %s329_s25 }
 0x1af   :  { %p454_p3 = scmp.lt.s32.totalorder %s452_s4, %s448_s30 }
 0x1b1   :  { %p455_p4 = por %p454_p3, %p453_p2 }
 0x1b3   :  { %p456_p5 = pnand %p455_p4, %p449_p1 }
 0x1b5   :  { %459 = shalt.err (!%p456_p5)
}
 0x1b6   :  { %331 = dma.vmem_to_hbm [thread:$0]  %s329_s25, 16, %s524_s3, [#allocation9]  }
 0x1b7   :  { %472 = dma.done.wait [#allocation4], 16  }
 0x1b8   :  { %473 = vsyncadd [#allocation4], 4294967280 }
 0x1b9   :  { %474 = dma.done.wait [#allocation9], 16  }
 0x1ba   :  { %475 = vsyncadd [#allocation9], 4294967280 }
 0x1bb   :  { %338 = vsyncpa [#allocation3], 1 }
 0x1bc   :  { %339 = vsyncpa [#allocation6], 1 }
 0x1bd   :  { %340 = vsyncpa [#allocation4], 1 }
 0x1be   :  { %341 = vsyncpa [#allocation9], 1 }

</bundles_post_ra>
